<compile_context>
chip_gen: v7x
topology: tpu7x:2x2x1
jax: 0.10.0
libtpu: 0.0.40
codegen_flags: <defaults>
</compile_context>

<pallas_src>
import functools

import jax
import jax.numpy as jnp
from jax.experimental import pallas as pl
from jax.experimental.pallas import tpu as pltpu


_LANES = 128
_SUB = 8
_TARGET_ROW_TILE = 2048  # 2048 x 128 x f32 = 1 MiB per input block


def _fscore_kernel(*refs, n_outputs, n_valid, row_tile, steps_per_chunk,
                   threshold, activation, needs_mask):
    """refs = (pr_0, ..., pr_{N-1}, gt, acc).

    acc block (resident across the 'arbitrary' axis) has shape (3*N, 8, 128) and
    holds per-(sublane, lane) partial sums of [gt*pr, pr, gt] for each output.
    """
    pr_refs = refs[:n_outputs]
    gt_ref = refs[n_outputs]
    acc_ref = refs[n_outputs + 1]

    c = pl.program_id(0)   # core/chunk axis ("parallel")
    i = pl.program_id(1)   # streaming/reduction axis ("arbitrary")

    @pl.when(i == 0)
    def _():
        acc_ref[...] = jnp.zeros_like(acc_ref)

    if needs_mask:
        # Logical (unclamped) block index -> global flat element index; anything
        # beyond the true element count (ragged tail, padded rows, clamped
        # out-of-range blocks) contributes exactly 0.
        blk = c * steps_per_chunk + i
        row0 = blk * row_tile
        row_idx = row0 + jax.lax.broadcasted_iota(jnp.int32, (row_tile, _LANES), 0)
        lane_idx = jax.lax.broadcasted_iota(jnp.int32, (row_tile, _LANES), 1)
        mask = (row_idx * _LANES + lane_idx) < n_valid
    else:
        mask = None

    def fold(x):
        # (row_tile, 128) -> (8, 128): tile-aligned reshape + adds over the leading
        # axis (pure VPU work; no cross-lane/XLU reduce in the steady-state loop).
        return jnp.sum(x.reshape(row_tile // _SUB, _SUB, _LANES), axis=0)

    gt = gt_ref[...].astype(jnp.float32)
    if mask is not None:
        gt = jnp.where(mask, gt, 0.0)
    gt_fold = fold(gt)

    for k in range(n_outputs):
        pr = pr_refs[k][...].astype(jnp.float32)
        if activation == "sigmoid":
            pr = jax.nn.sigmoid(pr)
        # activation in (None, 'none') -> identity (validated in the wrapper).
        if threshold is not None:
            pr = (pr > float(threshold)).astype(jnp.float32)
        if mask is not None:
            pr = jnp.where(mask, pr, 0.0)
        acc_ref[3 * k + 0] += fold(gt * pr)   # tp partials
        acc_ref[3 * k + 1] += fold(pr)        # sum(pr) partials
        acc_ref[3 * k + 2] += gt_fold         # sum(gt) partials


def _flatten_2d(x):
    """View x as (rows, 128) with rows % 8 == 0.

    Free (no HBM copy) whenever the element count is a multiple of 1024; otherwise
    only the ragged tail forces one jnp.pad copy. Padded elements are masked out
    in-kernel, so the pad value never affects the result (even with `threshold`).
    """
    flat = jnp.ravel(x)
    n = flat.shape[0]
    chunk = _SUB * _LANES
    padded = pl.cdiv(n, chunk) * chunk
    if padded != n:
        flat = jnp.pad(flat, (0, padded - n))
    return flat.reshape(padded // _LANES, _LANES)


def _choose_row_tile(rows, n_streams):
    # ~1 MiB f32 per stream per block; keep the total double-buffered input working
    # set under ~8 MiB so it fits scoped VMEM on every generation (incl. v7x).
    budget_bytes = 8 * 1024 * 1024
    per_row_bytes = _LANES * 4 * 2 * n_streams   # f32 upper bound, 2 buffers/stream
    cap = max(_SUB, (budget_bytes // per_row_bytes) // _SUB * _SUB)
    return min(_TARGET_ROW_TILE, cap, rows)


def _fscore_sums(outputs, annotation, *, threshold, activation):
    """Returns (N, 3) float32: [tp, sum(pr), sum(gt)] per output, in one pallas_call."""
    for o in outputs:
        assert o.shape == annotation.shape, (
            "fscore_loss: every output must have the same shape as the annotation")
    n_valid = int(annotation.size)
    n_out = len(outputs)

    gt2d = _flatten_2d(annotation)
    pr2ds = [_flatten_2d(o) for o in outputs]
    rows = gt2d.shape[0]

    row_tile = _choose_row_tile(rows, n_out + 1)
    total_steps = pl.cdiv(rows, row_tile)
    # Leading "parallel" axis: 2 chunks so v7x's two TensorCores split the stream;
    # on single-core chips it's just a 2-pass serial loop (negligible overhead).
    num_chunks = 2 if total_steps >= 2 else 1
    steps_per_chunk = pl.cdiv(total_steps, num_chunks)
    has_oob_blocks = num_chunks * steps_per_chunk > total_steps
    needs_mask = (rows * _LANES != n_valid) or (rows % row_tile != 0) or has_oob_blocks

    def in_index_map(c, i):
        blk = c * steps_per_chunk + i
        if has_oob_blocks:
            # Clamp out-of-range blocks onto valid memory; their contribution is
            # zeroed by the in-kernel mask.
            blk = jnp.minimum(blk, total_steps - 1)
        return (blk, 0)

    kernel = functools.partial(
        _fscore_kernel,
        n_outputs=n_out, n_valid=n_valid, row_tile=row_tile,
        steps_per_chunk=steps_per_chunk, threshold=threshold,
        activation=activation, needs_mask=needs_mask)

    acc = pl.pallas_call(
        kernel,
        out_shape=jax.ShapeDtypeStruct((num_chunks, 3 * n_out, _SUB, _LANES),
                                       jnp.float32),
        grid_spec=pltpu.PrefetchScalarGridSpec(
            num_scalar_prefetch=0,
            grid=(num_chunks, steps_per_chunk),
            in_specs=[pl.BlockSpec((row_tile, _LANES), in_index_map)
                      for _ in range(n_out + 1)],
            out_specs=pl.BlockSpec((None, 3 * n_out, _SUB, _LANES),
                                   lambda c, i: (c, 0, 0, 0)),
        ),
        compiler_params=pltpu.CompilerParams(
            dimension_semantics=("parallel", "arbitrary")),
    )(*pr2ds, gt2d)

    # (num_chunks, 3N, 8, 128) -> (N, 3); tiny final reduce (a few KB) in plain JAX.
    return acc.reshape(num_chunks, n_out, 3, _SUB * _LANES).sum(axis=(0, 3))


def fscore_loss(outputs, annotation, *, beta=1, eps=1e-7, threshold=None,
                activation="sigmoid"):
    """Pallas equivalent of fscoreLoss.forward (single array or a list of arrays)."""
    if activation not in (None, "none", "sigmoid"):
        # TODO(synk): 'softmax2d' (per-pixel channel softmax) not implemented in-kernel.
        raise NotImplementedError("Activation implemented for sigmoid and none")

    outs = list(outputs) if isinstance(outputs, (list, tuple)) else [outputs]
    partials = _fscore_sums(outs, annotation, threshold=threshold,
                            activation=activation)            # (N, 3)

    b2 = float(beta) ** 2
    tp = partials[:, 0]
    fp = partials[:, 1] - tp
    fn = partials[:, 2] - tp
    score = ((1.0 + b2) * tp + eps) / ((1.0 + b2) * tp + b2 * fn + fp + eps)
    return jnp.sum(1.0 - score)


def _reference_loss(pr, gt, beta=1, eps=1e-7, threshold=None, activation="sigmoid"):
    pr = pr.astype(jnp.float32)
    if activation == "sigmoid":
        pr = jax.nn.sigmoid(pr)
    if threshold is not None:
        pr = (pr > threshold).astype(jnp.float32)
    gt = gt.astype(jnp.float32)
    tp = jnp.sum(gt * pr)
    fp = jnp.sum(pr) - tp
    fn = jnp.sum(gt) - tp
    b2 = beta * beta
    score = ((1 + b2) * tp + eps) / ((1 + b2) * tp + b2 * fn + fp + eps)
    return 1.0 - score


if __name__ == "__main__":
    key = jax.random.PRNGKey(0)
    k1, k2, k3, k4 = jax.random.split(key, 4)

    # Small NCHW shapes, as PyTorch would feed the loss (segmentation logits vs mask).
    outputs = jax.random.normal(k1, (2, 4, 16, 16), dtype=jnp.float32)
    annotation = (jax.random.uniform(k2, (2, 4, 16, 16)) > 0.5).astype(jnp.float32)

    loss = jax.block_until_ready(fscore_loss(outputs, annotation))
    ref = jax.block_until_ready(_reference_loss(outputs, annotation))
    assert jnp.allclose(loss, ref, atol=1e-5, rtol=1e-5), (loss, ref)

    # List branch: fused into a single pallas_call (annotation streamed once).
    loss_list = jax.block_until_ready(fscore_loss([outputs, outputs * 0.5], annotation))
    ref_list = jax.block_until_ready(_reference_loss(outputs, annotation)
                                     + _reference_loss(outputs * 0.5, annotation))
    assert jnp.allclose(loss_list, ref_list, atol=1e-5, rtol=1e-5), (loss_list, ref_list)

    # Ragged size, multiple blocks, two parallel chunks, with thresholding:
    # exercises in-kernel tail masking and the clamped index map.
    out2 = jax.random.normal(k3, (2, 3, 300, 301), dtype=jnp.float32)
    ann2 = (jax.random.uniform(k4, (2, 3, 300, 301)) > 0.5).astype(jnp.float32)
    loss2 = jax.block_until_ready(fscore_loss(out2, ann2, threshold=0.5))
    ref2 = jax.block_until_ready(_reference_loss(out2, ann2, threshold=0.5))
    assert jnp.allclose(loss2, ref2, atol=1e-5, rtol=1e-5), (loss2, ref2)

    print("KERNEL_OK")
</pallas_src>

<mosaic_0001>
module attributes {stable_mosaic.version = 11 : i64} {
  func.func @_fscore_kernel(%arg0: i32, %arg1: i32, %arg2: memref<16x128xf32, #tpu.memory_space<vmem>>, %arg3: memref<16x128xf32, #tpu.memory_space<vmem>>, %arg4: memref<1x3x8x128xf32, #tpu.memory_space<vmem>>) attributes {dimension_semantics = [#tpu.dimension_semantics<parallel>, #tpu.dimension_semantics<arbitrary>], iteration_bounds = array<i64: 1, 1>, scalar_prefetch = 0 : i64, scratch_operands = 0 : i64, tpu.core_type = #tpu.core_type<tc>, window_params = [{transform_indices = @transform_0, window_bounds = array<i64: 16, 128>}, {transform_indices = @transform_1, window_bounds = array<i64: 16, 128>}, {transform_indices = @transform_2, window_bounds = array<i64: 1, 3, 8, 128>}]} {
    %c0_i32 = arith.constant 0 : i32
    %0 = arith.cmpi eq, %arg1, %c0_i32 : i32
    %1 = arith.extui %0 : i1 to i32
    %c0_i32_0 = arith.constant 0 : i32
    %2 = arith.cmpi ne, %1, %c0_i32_0 : i32
    scf.if %2 {
      %cst_29 = arith.constant 0.000000e+00 : f32
      %35 = vector.broadcast %cst_29 : f32 to vector<3x8x128xf32>
      %c0_30 = arith.constant 0 : index
      %c0_31 = arith.constant 0 : index
      %c0_32 = arith.constant 0 : index
      %c0_33 = arith.constant 0 : index
      %36 = vector.load %arg4[%c0_30, %c0_31, %c0_32, %c0_33] : memref<1x3x8x128xf32, #tpu.memory_space<vmem>>, vector<1x3x8x128xf32>
      %37 = vector.shape_cast %36 : vector<1x3x8x128xf32> to vector<3x8x128xf32>
      %38 = vector.shape_cast %35 : vector<3x8x128xf32> to vector<1x3x8x128xf32>
      tpu.vector_store %arg4[%c0_30, %c0_31, %c0_32, %c0_33], %38 {strides = array<i32>} : memref<1x3x8x128xf32, #tpu.memory_space<vmem>>, vector<1x3x8x128xf32>,
    } else {
    }
    %c0 = arith.constant 0 : index
    %c0_1 = arith.constant 0 : index
    %3 = vector.load %arg3[%c0, %c0_1] : memref<16x128xf32, #tpu.memory_space<vmem>>, vector<16x128xf32>
    %4 = vector.shape_cast %3 : vector<16x128xf32> to vector<2x8x128xf32>
    %cst = arith.constant dense<0.000000e+00> : vector<8x128xf32>
    %5 = vector.multi_reduction <add>, %4, %cst [0] : vector<2x8x128xf32> to vector<8x128xf32>
    %c0_2 = arith.constant 0 : index
    %c0_3 = arith.constant 0 : index
    %6 = vector.load %arg2[%c0_2, %c0_3] : memref<16x128xf32, #tpu.memory_space<vmem>>, vector<16x128xf32>
    %7 = arith.negf %6 : vector<16x128xf32>
    %8 = math.exp %7 : vector<16x128xf32>
    %cst_4 = arith.constant 1.000000e+00 : f32
    %9 = vector.broadcast %cst_4 : f32 to vector<16x128xf32>
    %10 = arith.addf %9, %8 : vector<16x128xf32>
    %11 = arith.divf %9, %10 : vector<16x128xf32>
    %c0_5 = arith.constant 0 : index
    %c0_6 = arith.constant 0 : index
    %c0_7 = arith.constant 0 : index
    %c0_8 = arith.constant 0 : index
    %12 = vector.load %arg4[%c0_5, %c0_6, %c0_7, %c0_8] : memref<1x3x8x128xf32, #tpu.memory_space<vmem>>, vector<1x1x8x128xf32>
    %13 = vector.shape_cast %12 : vector<1x1x8x128xf32> to vector<8x128xf32>
    %14 = arith.mulf %3, %11 : vector<16x128xf32>
    %15 = vector.shape_cast %14 : vector<16x128xf32> to vector<2x8x128xf32>
    %cst_9 = arith.constant dense<0.000000e+00> : vector<8x128xf32>
    %16 = vector.multi_reduction <add>, %15, %cst_9 [0] : vector<2x8x128xf32> to vector<8x128xf32>
    %17 = arith.addf %13, %16 : vector<8x128xf32>
    %c0_10 = arith.constant 0 : index
    %c0_11 = arith.constant 0 : index
    %c0_12 = arith.constant 0 : index
    %c0_13 = arith.constant 0 : index
    %18 = vector.load %arg4[%c0_10, %c0_11, %c0_12, %c0_13] : memref<1x3x8x128xf32, #tpu.memory_space<vmem>>, vector<1x1x8x128xf32>
    %19 = vector.shape_cast %18 : vector<1x1x8x128xf32> to vector<8x128xf32>
    %20 = vector.shape_cast %17 : vector<8x128xf32> to vector<1x1x8x128xf32>
    tpu.vector_store %arg4[%c0_10, %c0_11, %c0_12, %c0_13], %20 {strides = array<i32>} : memref<1x3x8x128xf32, #tpu.memory_space<vmem>>, vector<1x1x8x128xf32>,
    %c0_14 = arith.constant 0 : index
    %c1 = arith.constant 1 : index
    %c0_15 = arith.constant 0 : index
    %c0_16 = arith.constant 0 : index
    %21 = vector.load %arg4[%c0_14, %c1, %c0_15, %c0_16] : memref<1x3x8x128xf32, #tpu.memory_space<vmem>>, vector<1x1x8x128xf32>
    %22 = vector.shape_cast %21 : vector<1x1x8x128xf32> to vector<8x128xf32>
    %23 = vector.shape_cast %11 : vector<16x128xf32> to vector<2x8x128xf32>
    %cst_17 = arith.constant dense<0.000000e+00> : vector<8x128xf32>
    %24 = vector.multi_reduction <add>, %23, %cst_17 [0] : vector<2x8x128xf32> to vector<8x128xf32>
    %25 = arith.addf %22, %24 : vector<8x128xf32>
    %c0_18 = arith.constant 0 : index
    %c1_19 = arith.constant 1 : index
    %c0_20 = arith.constant 0 : index
    %c0_21 = arith.constant 0 : index
    %26 = vector.load %arg4[%c0_18, %c1_19, %c0_20, %c0_21] : memref<1x3x8x128xf32, #tpu.memory_space<vmem>>, vector<1x1x8x128xf32>
    %27 = vector.shape_cast %26 : vector<1x1x8x128xf32> to vector<8x128xf32>
    %28 = vector.shape_cast %25 : vector<8x128xf32> to vector<1x1x8x128xf32>
    tpu.vector_store %arg4[%c0_18, %c1_19, %c0_20, %c0_21], %28 {strides = array<i32>} : memref<1x3x8x128xf32, #tpu.memory_space<vmem>>, vector<1x1x8x128xf32>,
    %c0_22 = arith.constant 0 : index
    %c2 = arith.constant 2 : index
    %c0_23 = arith.constant 0 : index
    %c0_24 = arith.constant 0 : index
    %29 = vector.load %arg4[%c0_22, %c2, %c0_23, %c0_24] : memref<1x3x8x128xf32, #tpu.memory_space<vmem>>, vector<1x1x8x128xf32>
    %30 = vector.shape_cast %29 : vector<1x1x8x128xf32> to vector<8x128xf32>
    %31 = arith.addf %30, %5 : vector<8x128xf32>
    %c0_25 = arith.constant 0 : index
    %c2_26 = arith.constant 2 : index
    %c0_27 = arith.constant 0 : index
    %c0_28 = arith.constant 0 : index
    %32 = vector.load %arg4[%c0_25, %c2_26, %c0_27, %c0_28] : memref<1x3x8x128xf32, #tpu.memory_space<vmem>>, vector<1x1x8x128xf32>
    %33 = vector.shape_cast %32 : vector<1x1x8x128xf32> to vector<8x128xf32>
    %34 = vector.shape_cast %31 : vector<8x128xf32> to vector<1x1x8x128xf32>
    tpu.vector_store %arg4[%c0_25, %c2_26, %c0_27, %c0_28], %34 {strides = array<i32>} : memref<1x3x8x128xf32, #tpu.memory_space<vmem>>, vector<1x1x8x128xf32>,
    return
  }
  func.func @transform_0(%arg0: i32, %arg1: i32) -> (i32, i32) {
    %c1_i32 = arith.constant 1 : i32
    %0 = arith.muli %arg0, %c1_i32 : i32
    %1 = arith.addi %0, %arg1 : i32
    %c0_i32 = arith.constant 0 : i32
    %c0_i32_0 = arith.constant 0 : i32
    return %1, %c0_i32 : i32, i32
  }
  func.func @transform_1(%arg0: i32, %arg1: i32) -> (i32, i32) {
    %c1_i32 = arith.constant 1 : i32
    %0 = arith.muli %arg0, %c1_i32 : i32
    %1 = arith.addi %0, %arg1 : i32
    %c0_i32 = arith.constant 0 : i32
    %c0_i32_0 = arith.constant 0 : i32
    return %1, %c0_i32 : i32, i32
  }
  func.func @transform_2(%arg0: i32, %arg1: i32) -> (i32, i32, i32, i32) {
    %c0_i32 = arith.constant 0 : i32
    %c0_i32_0 = arith.constant 0 : i32
    %c0_i32_1 = arith.constant 0 : i32
    %c0_i32_2 = arith.constant 0 : i32
    return %arg0, %c0_i32, %c0_i32_0, %c0_i32_1 : i32, i32, i32, i32
  }
}

</mosaic_0001>

<bundles_post_ra>
// kernel: tpu_custom_call.1
= control target key start
LH: loop header
LB: loop body
LE: loop exit
PB: predicated region body
PF: predicated region fallthrough
CT: control target
= control target key end

     0   :  { %7 = vsyncpa [#allocation3], 0  ;;  %s262_s0 = inlined_call_operand.hbm [shape: f32[16,128], index: 0, kind: input, shape index: {}]   ;;  %s263_s1 = inlined_call_operand.hbm [shape: f32[16,128], index: 1, kind: input, shape index: {}]   ;;  %s264_s2 = inlined_call_operand.hbm [shape: f32[1,3,8,128], index: 2, kind: output, shape index: {}]  }
   0x1   :  { %8 = vsyncpa [#allocation6], 0 }
   0x2   :  { %9 = vsyncpa [#allocation4], 0  ;;  %s197_s9 = smov [#allocation2]   ;;  %s125_s13 = scalar_lea.hbm %s262_s0, 256 }
   0x3   :  { %s19_s10 = sshll.u32 %s197_s9, 4  ;;  %p126_p0 = scmp.ne.s32.totalorder %s262_s0, %s125_s13  ;;  %s20_s10 = int_to_ptr.vmem [resolvable:$true] %s19_s10 }
   0x4   :  { %p129_p1 = scmp.lt.u32.totalorder %s125_s13, %s262_s0 }
   0x6   :  { %p131_p2 = pnand %p129_p1, %p126_p0 }
   0x8   :  { %134 = shalt.err (!%p131_p2)
}
   0x9   :  { %s135_s18 = scalar_lea.vmem %s20_s10, 256  ;;  %p140_p4 = scmp.lt.s32.totalorder %s20_s10, %s20_s10 }
   0xa   :  { %p136_p3 = scmp.ne.s32.totalorder %s20_s10, %s135_s18  ;;  %p141_p5 = scmp.lt.s32.totalorder %s135_s18, %s135_s18 }
   0xc   :  { %p142_p6 = por %p141_p5, %p140_p4 }
   0xe   :  { %p143_p7 = pnand %p142_p6, %p136_p3 }
  0x10   :  { %146 = shalt.err (!%p143_p7)
}
  0x11   :  { %s198_s19 = smov 128   ;;  %s199_s20 = smov 8  }
  0x12   :  { %25 = dma.hbm_to_vmem [thread:$0]  %s262_s0, 256, %s20_s10, [#allocation3], %s198_s19, %s198_s19, %s199_s20  }
  0x13   :  { %s200_s23 = smov [#allocation5]   ;;  %s147_s27 = scalar_lea.hbm %s263_s1, 256 }
  0x14   :  { %s35_s24 = sshll.u32 %s200_s23, 4  ;;  %p148_p8 = scmp.ne.s32.totalorder %s263_s1, %s147_s27  ;;  %s36_s24 = int_to_ptr.vmem [resolvable:$true] %s35_s24 }
  0x15   :  { %p151_p9 = scmp.lt.u32.totalorder %s147_s27, %s263_s1 }
  0x17   :  { %p153_p10 = pnand %p151_p9, %p148_p8 }
  0x19   :  { %156 = shalt.err (!%p153_p10)
}
  0x1a   :  { %s157_s4 = scalar_lea.vmem %s36_s24, 256  ;;  %p162_p12 = scmp.lt.s32.totalorder %s36_s24, %s36_s24 }
  0x1b   :  { %p158_p11 = scmp.ne.s32.totalorder %s36_s24, %s157_s4  ;;  %p163_p13 = scmp.lt.s32.totalorder %s157_s4, %s157_s4 }
  0x1d   :  { %p164_p0 = por %p163_p13, %p162_p12 }
  0x1f   :  { %p165_p1 = pnand %p164_p0, %p158_p11 }
  0x21   :  { %168 = shalt.err (!%p165_p1)
}
  0x22   :  { %41 = dma.hbm_to_vmem [thread:$0]  %s263_s1, 256, %s36_s24, [#allocation6], %s198_s19, %s198_s19, %s199_s20  }
  0x23   :  { %191 = dma.done.wait [#allocation3], 256  }
  0x24   :  { %192 = vsyncadd [#allocation3], 4294967040 }
  0x25   :  { %193 = dma.done.wait [#allocation6], 256  }
  0x26   :  { %194 = vsyncadd [#allocation6], 4294967040  ;;  %v59_v0 = vld [vmem:[#allocation5] sm:$0xff]  ;;  %v60_v1 = vld [vmem:[#allocation5 + $0x8] sm:$0xff]  ;;  %s201_s1 = smov [#allocation7]  }
  0x27   :  { %v62_v2 = vld [vmem:[#allocation2] sm:$0xff]  ;;  %v63_v3 = vld [vmem:[#allocation2 + $0x8] sm:$0xff]  ;;  %v61_v5 = vadd.f32 %v60_v1, %v59_v0  ;;  %s96_s6 = sshll.u32 %s201_s1, 4  ;;  %s97_s6 = int_to_ptr.vmem [resolvable:$true] %s96_s6 }
  0x28   :  { %v109_v4 = vmul.f32 -1.442695, %v62_v2  ;;  %v110_v6 = vmul.f32 -1.442695, %v63_v3  ;;  %s169_s7 = scalar_lea.vmem %s97_s6, 384  ;;  %p174_p3 = scmp.lt.s32.totalorder %s97_s6, %s97_s6 }
  0x29   :  { %90 = vst [vmem:[#allocation7 + $0x10] sm:$0xff] %v61_v5  ;;  %p170_p2 = scmp.ne.s32.totalorder %s97_s6, %s169_s7  ;;  %p175_p4 = scmp.lt.s32.totalorder %s169_s7, %s169_s7 }
  0x2a   :  { %117 = vpow2.f32 %v109_v4 }
  0x2b   :  { %119 = vpow2.f32 %v110_v6  ;;  %p176_p5 = por %p175_p4, %p174_p3 }
  0x2d   :  { %p177_p6 = pnand %p176_p5, %p170_p2 }
  0x34   :  { %v118_v7 = vpop.eup %117 }
  0x35   :  { %v120_v8 = vpop.eup %119  ;;  %v70_v9 = vadd.f32 1.0, %v118_v7 }
  0x36   :  { %v71_v10 = vadd.f32 1.0, %v120_v8 }
  0x37   :  { %121 = vrcp.f32 %v70_v9 }
  0x38   :  { %123 = vrcp.f32 %v71_v10 }
  0x41   :  { %v122_v11 = vpop.eup %121 }
  0x42   :  { %v124_v12 = vpop.eup %123  ;;  %v77_v13 = vmul.f32 %v122_v11, %v59_v0 }
  0x43   :  { %v78_v14 = vmul.f32 %v124_v12, %v60_v1  ;;  %v84_v15 = vadd.f32 %v124_v12, %v122_v11 }
  0x45   :  { %v79_v16 = vadd.f32 %v78_v14, %v77_v13  ;;  %86 = vst [vmem:[#allocation7 + $0x8] sm:$0xff] %v84_v15 }
  0x47   :  { %81 = vst [vmem:[#allocation7] sm:$0xff] %v79_v16 }
  0x48   :  { %180 = shalt.err (!%p177_p6)
}
  0x49   :  { %s181_s10 = scalar_lea.hbm %s264_s2, 384 }
  0x4a   :  { %p182_p7 = scmp.ne.s32.totalorder %s264_s2, %s181_s10  ;;  %p185_p8 = scmp.lt.u32.totalorder %s181_s10, %s264_s2 }
  0x4c   :  { %p187_p9 = pnand %p185_p8, %p182_p7 }
  0x4e   :  { %190 = shalt.err (!%p187_p9)
}
  0x4f   :  { %102 = dma.vmem_to_hbm [thread:$0]  %s97_s6, 384, %s264_s2, [#allocation4], %s198_s19, %s198_s19, %s199_s20  }
  0x50   :  { %195 = dma.done.wait [#allocation4], 384  }
  0x51   :  { %196 = vsyncadd [#allocation4], 4294966912 }
  0x52   :  { %106 = vsyncpa [#allocation3], 1 }
  0x53   :  { %107 = vsyncpa [#allocation6], 1 }
  0x54   :  { %108 = vsyncpa [#allocation4], 1 }

</bundles_post_ra>
